<compile_context>
chip_gen: v7x
topology: tpu7x:2x2x1
jax: 0.10.0
libtpu: 0.0.40
codegen_flags: <defaults>
</compile_context>

<pallas_src>
import numpy as np
import jax
import jax.numpy as jnp
from jax.experimental import pallas as pl
from jax.experimental.pallas import tpu as pltpu


def smplify_xmc_loss(
    joints, gt_joints, joints_conf, joint_weights,
    body_pose, presented_body_pose,
    left_hand_pose, right_hand_pose,
    expression, jaw_pose, betas,
    global_orient, init_global_orient,
    cam_R, cam_t, focal, center,
    *, rho=100.0, data_weight=1.0, body_pose_weight=0.0,
    hand_prior_weight=1.0, expr_prior_weight=1.0, jaw_prior_weight=1.0,
    shape_weight=1.0, body_global_orient_weight=1.0,
):
    f32 = jnp.float32
    B, J, _ = joints.shape

    nbp = body_pose.shape[-1]
    ngo = global_orient.shape[-1]
    nlh = left_hand_pose.shape[-1]
    nrh = right_hand_pose.shape[-1]
    ne = expression.shape[-1]
    nja = jaw_pose.shape[-1]
    LV = nbp + ngo + nlh + nrh + ne + nja          # densely lane-packed priors
    n_diff = nbp + ngo                             # lanes compared vs presented

    # ---- trace-time scalar weights (conditional terms compile away) ----
    rho_f = float(rho)
    rho2 = rho_f * rho_f
    dw = float(data_weight)
    bpw = float(body_pose_weight)
    hw = float(hand_prior_weight)
    ew = float(expr_prior_weight)
    jpw = float(jaw_prior_weight)
    sw = float(shape_weight)
    gow = float(body_global_orient_weight)

    # ---- joint quantities: per-component planes, J dense on lanes, no pad ----
    joints_t = jnp.moveaxis(jnp.asarray(joints, f32), -1, 0)     # (3, B, J)
    gt_t = jnp.moveaxis(jnp.asarray(gt_joints, f32), -1, 0)      # (2, B, J)
    conf = jnp.asarray(joints_conf, f32)                         # (B, J)
    jwt = jnp.asarray(joint_weights, f32)                        # (B, J)

    # ---- pose/shape priors packed densely along lanes (no 128-padding) ----
    vec_all = jnp.concatenate(
        [jnp.asarray(a, f32) for a in (body_pose, global_orient,
                                       left_hand_pose, right_hand_pose,
                                       expression, jaw_pose)], axis=-1)   # (B, LV)
    pres_all = jnp.concatenate(
        [jnp.asarray(presented_body_pose, f32),
         jnp.asarray(init_global_orient, f32)], axis=-1)                  # (B, n_diff)
    pres_all = jnp.pad(pres_all, ((0, 0), (0, LV - n_diff)))              # (B, LV)
    betas_f = jnp.asarray(betas, f32)                                     # (B, NB)

    # per-lane prior weights, baked at trace time (numpy -> tiny constant)
    w_np = np.zeros((1, LV), np.float32)
    o = 0
    w_np[0, o:o + nbp] = bpw                       # body-pose MSE * weight
    o += nbp
    if bpw == 0.0:
        # global-orient x/z loss only active when body_pose_weight == 0
        # TODO(synk): original GlobalOrientLoss compares rotation matrices;
        # here we penalize squared x/z axis-angle component differences.
        w_np[0, o] = gow
        w_np[0, o + 2] = gow
    o += ngo
    w_np[0, o:o + nlh + nrh] = hw * hw             # L2 hand priors
    o += nlh + nrh
    w_np[0, o:o + ne] = (ew * ew) if ew > 0.0 else 0.0   # expression prior
    o += ne
    w_np[0, o:o + nja] = jpw * jpw                 # jaw prior (L2 of jaw*jpw)
    wlane = jnp.asarray(w_np)                      # (1, LV)

    # ---- runtime camera parameters: 16 scalars in SMEM ----
    params = jnp.concatenate([jnp.asarray(cam_R, f32).reshape(9),
                              jnp.asarray(cam_t, f32).reshape(3),
                              jnp.asarray(focal, f32).reshape(2),
                              jnp.asarray(center, f32).reshape(2)])   # (16,)

    def kernel(params_ref, jxyz_ref, gxy_ref, conf_ref, jwt_ref,
               vec_ref, pres_ref, wlane_ref, betas_ref, out_ref):
        r00, r01, r02 = params_ref[0], params_ref[1], params_ref[2]
        r10, r11, r12 = params_ref[3], params_ref[4], params_ref[5]
        r20, r21, r22 = params_ref[6], params_ref[7], params_ref[8]
        tx, ty, tz = params_ref[9], params_ref[10], params_ref[11]
        fx, fy = params_ref[12], params_ref[13]
        cx, cy = params_ref[14], params_ref[15]

        jx, jy, jz = jxyz_ref[0], jxyz_ref[1], jxyz_ref[2]
        gx, gy = gxy_ref[0], gxy_ref[1]

        # perspective camera: scalar-broadcast FMAs on the VPU (no MXU)
        camx = r00 * jx + r01 * jy + r02 * jz + tx
        camy = r10 * jx + r11 * jy + r12 * jz + ty
        camz = r20 * jx + r21 * jy + r22 * jz + tz
        inv_z = 1.0 / camz                  # exact divide (accuracy headroom)
        px = fx * camx * inv_z + cx
        py = fy * camy * inv_z + cy

        # GMoF-robustified, confidence-weighted joint data term
        rx = gx - px
        ry = gy - py
        rx2 = rx * rx
        ry2 = ry * ry
        dx = (rho2 * rx2) * pl.reciprocal(rx2 + rho2, approx=True)
        dy = (rho2 * ry2) * pl.reciprocal(ry2 + rho2, approx=True)
        w = jwt_ref[...] * conf_ref[...]
        data_sum = jnp.sum(w * w * (dx + dy)) * (dw * dw)

        # all pose priors fused into one weighted-square + one reduction
        d = vec_ref[...] - pres_ref[...]    # pres padded with zeros beyond n_diff
        prior_sum = jnp.sum(wlane_ref[...] * d * d)

        total = data_sum + prior_sum

        # shape prior: (sum betas^2)^2 * shape_weight
        # TODO(synk): gt_height/gt_weight measurements branch (mesh height/mass
        # via full SMPL-X LBS) is not reproduced.
        if sw > 0.0:
            be = betas_ref[...]
            s = jnp.sum(be * be)
            total = total + s * s * sw

        # TODO(synk): mimicked/general self-contact losses (msc_crit, sc_crit)
        # need geodesic masks + HD mesh sampling; default weights are 0.

        out_ref[0, 0] = total

    out = pl.pallas_call(
        kernel,
        out_shape=jax.ShapeDtypeStruct((1, 1), jnp.float32),
        in_specs=([pl.BlockSpec(memory_space=pltpu.MemorySpace.SMEM)]
                  + [pl.BlockSpec(memory_space=pltpu.MemorySpace.VMEM)] * 8),
        out_specs=pl.BlockSpec(memory_space=pltpu.MemorySpace.SMEM),
    )(params, joints_t, gt_t, conf, jwt, vec_all, pres_all, wlane, betas_f)
    return out[0, 0]


def reference_loss(
    joints, gt_joints, joints_conf, joint_weights,
    body_pose, presented_body_pose,
    left_hand_pose, right_hand_pose,
    expression, jaw_pose, betas,
    global_orient, init_global_orient,
    cam_R, cam_t, focal, center,
    *, rho, data_weight, body_pose_weight, hand_prior_weight,
    expr_prior_weight, jaw_prior_weight, shape_weight,
    body_global_orient_weight,
):
    cam = jnp.einsum('bji,ki->bjk', joints, cam_R) + cam_t
    proj = cam[..., :2] / cam[..., 2:3] * focal + center
    w = (joint_weights * joints_conf)[..., None]
    res = gt_joints - proj
    sq = res ** 2
    diff = rho ** 2 * sq / (sq + rho ** 2)
    joint_loss = jnp.sum(w ** 2 * diff) * data_weight ** 2

    go_loss = 0.0
    if body_pose_weight == 0.0:
        d = global_orient - init_global_orient
        go_loss = body_global_orient_weight * jnp.sum(d[:, 0] ** 2 + d[:, 2] ** 2)
    body_pose_loss = jnp.sum((body_pose - presented_body_pose) ** 2) * body_pose_weight
    lh_loss = jnp.sum(left_hand_pose ** 2) * hand_prior_weight ** 2
    rh_loss = jnp.sum(right_hand_pose ** 2) * hand_prior_weight ** 2
    expr_loss = (jnp.sum(expression ** 2) * expr_prior_weight ** 2
                 if expr_prior_weight > 0 else 0.0)
    jaw_loss = jnp.sum((jaw_pose * jaw_prior_weight) ** 2)
    shape_loss = ((jnp.sum(betas ** 2) ** 2) * shape_weight
                  if shape_weight > 0 else 0.0)
    return (joint_loss + go_loss + shape_loss + body_pose_loss + lh_loss
            + rh_loss + jaw_loss + expr_loss)


if __name__ == "__main__":
    B, J, NBP, NH, NE, NB = 2, 32, 63, 12, 10, 10
    key = jax.random.PRNGKey(0)
    ks = jax.random.split(key, 12)

    joints = 0.5 * jax.random.normal(ks[0], (B, J, 3), jnp.float32)
    gt_joints = 128.0 + 40.0 * jax.random.normal(ks[1], (B, J, 2), jnp.float32)
    joints_conf = jax.nn.sigmoid(jax.random.normal(ks[2], (B, J), jnp.float32))
    joint_weights = jnp.ones((B, J), jnp.float32)
    body_pose = 0.1 * jax.random.normal(ks[3], (B, NBP), jnp.float32)
    presented_body_pose = 0.1 * jax.random.normal(ks[4], (B, NBP), jnp.float32)
    left_hand_pose = 0.1 * jax.random.normal(ks[5], (B, NH), jnp.float32)
    right_hand_pose = 0.1 * jax.random.normal(ks[6], (B, NH), jnp.float32)
    expression = 0.1 * jax.random.normal(ks[7], (B, NE), jnp.float32)
    jaw_pose = 0.1 * jax.random.normal(ks[8], (B, 3), jnp.float32)
    betas = 0.1 * jax.random.normal(ks[9], (B, NB), jnp.float32)
    global_orient = 0.1 * jax.random.normal(ks[10], (B, 3), jnp.float32)
    init_global_orient = 0.1 * jax.random.normal(ks[11], (B, 3), jnp.float32)

    theta = 0.05
    cam_R = jnp.array([[np.cos(theta), 0.0, np.sin(theta)],
                       [0.0, 1.0, 0.0],
                       [-np.sin(theta), 0.0, np.cos(theta)]], jnp.float32)
    cam_t = jnp.array([0.1, -0.05, 5.0], jnp.float32)
    focal = jnp.array([500.0, 500.0], jnp.float32)
    center = jnp.array([128.0, 128.0], jnp.float32)

    args = (joints, gt_joints, joints_conf, joint_weights,
            body_pose, presented_body_pose,
            left_hand_pose, right_hand_pose,
            expression, jaw_pose, betas,
            global_orient, init_global_orient,
            cam_R, cam_t, focal, center)

    # config 1: body_pose_weight == 0 -> global-orient x/z branch active
    w1 = dict(rho=100.0, data_weight=1.0, body_pose_weight=0.0,
              hand_prior_weight=0.5, expr_prior_weight=0.5,
              jaw_prior_weight=0.5, shape_weight=0.5,
              body_global_orient_weight=1.0)
    # config 2: body_pose_weight != 0 -> body-pose MSE branch active
    w2 = dict(rho=100.0, data_weight=1.0, body_pose_weight=0.3,
              hand_prior_weight=0.5, expr_prior_weight=0.5,
              jaw_prior_weight=0.5, shape_weight=0.5,
              body_global_orient_weight=1.0)

    for wts in (w1, w2):
        total = jax.block_until_ready(smplify_xmc_loss(*args, **wts))
        ref = reference_loss(*args, **wts)
        assert np.isfinite(float(total))
        np.testing.assert_allclose(float(total), float(ref), rtol=2e-3, atol=1e-3)

    print("KERNEL_OK")
</pallas_src>

<mosaic_0001>
module attributes {stable_mosaic.version = 11 : i64} {
  func.func @kernel(%arg0: memref<16xf32, #tpu.memory_space<smem>>, %arg1: memref<3x2x32xf32, #tpu.memory_space<vmem>>, %arg2: memref<2x2x32xf32, #tpu.memory_space<vmem>>, %arg3: memref<2x32xf32, #tpu.memory_space<vmem>>, %arg4: memref<2x32xf32, #tpu.memory_space<vmem>>, %arg5: memref<2x103xf32, #tpu.memory_space<vmem>>, %arg6: memref<2x103xf32, #tpu.memory_space<vmem>>, %arg7: memref<1x103xf32, #tpu.memory_space<vmem>>, %arg8: memref<2x10xf32, #tpu.memory_space<vmem>>, %arg9: memref<1x1xf32, #tpu.memory_space<smem>>) attributes {dimension_semantics = [], scalar_prefetch = 0 : i64, scratch_operands = 0 : i64, tpu.core_type = #tpu.core_type<tc>} {
    %c0 = arith.constant 0 : index
    %0 = memref.load %arg0[%c0] : memref<16xf32, #tpu.memory_space<smem>>
    %c1 = arith.constant 1 : index
    %1 = memref.load %arg0[%c1] : memref<16xf32, #tpu.memory_space<smem>>
    %c2 = arith.constant 2 : index
    %2 = memref.load %arg0[%c2] : memref<16xf32, #tpu.memory_space<smem>>
    %c3 = arith.constant 3 : index
    %3 = memref.load %arg0[%c3] : memref<16xf32, #tpu.memory_space<smem>>
    %c4 = arith.constant 4 : index
    %4 = memref.load %arg0[%c4] : memref<16xf32, #tpu.memory_space<smem>>
    %c5 = arith.constant 5 : index
    %5 = memref.load %arg0[%c5] : memref<16xf32, #tpu.memory_space<smem>>
    %c6 = arith.constant 6 : index
    %6 = memref.load %arg0[%c6] : memref<16xf32, #tpu.memory_space<smem>>
    %c7 = arith.constant 7 : index
    %7 = memref.load %arg0[%c7] : memref<16xf32, #tpu.memory_space<smem>>
    %c8 = arith.constant 8 : index
    %8 = memref.load %arg0[%c8] : memref<16xf32, #tpu.memory_space<smem>>
    %c9 = arith.constant 9 : index
    %9 = memref.load %arg0[%c9] : memref<16xf32, #tpu.memory_space<smem>>
    %c10 = arith.constant 10 : index
    %10 = memref.load %arg0[%c10] : memref<16xf32, #tpu.memory_space<smem>>
    %c11 = arith.constant 11 : index
    %11 = memref.load %arg0[%c11] : memref<16xf32, #tpu.memory_space<smem>>
    %c12 = arith.constant 12 : index
    %12 = memref.load %arg0[%c12] : memref<16xf32, #tpu.memory_space<smem>>
    %c13 = arith.constant 13 : index
    %13 = memref.load %arg0[%c13] : memref<16xf32, #tpu.memory_space<smem>>
    %c14 = arith.constant 14 : index
    %14 = memref.load %arg0[%c14] : memref<16xf32, #tpu.memory_space<smem>>
    %c15 = arith.constant 15 : index
    %15 = memref.load %arg0[%c15] : memref<16xf32, #tpu.memory_space<smem>>
    %c0_0 = arith.constant 0 : index
    %c0_1 = arith.constant 0 : index
    %c0_2 = arith.constant 0 : index
    %16 = vector.load %arg1[%c0_0, %c0_1, %c0_2] : memref<3x2x32xf32, #tpu.memory_space<vmem>>, vector<1x2x32xf32>
    %17 = vector.shape_cast %16 : vector<1x2x32xf32> to vector<2x32xf32>
    %c1_3 = arith.constant 1 : index
    %c0_4 = arith.constant 0 : index
    %c0_5 = arith.constant 0 : index
    %18 = vector.load %arg1[%c1_3, %c0_4, %c0_5] : memref<3x2x32xf32, #tpu.memory_space<vmem>>, vector<1x2x32xf32>
    %19 = vector.shape_cast %18 : vector<1x2x32xf32> to vector<2x32xf32>
    %c2_6 = arith.constant 2 : index
    %c0_7 = arith.constant 0 : index
    %c0_8 = arith.constant 0 : index
    %20 = vector.load %arg1[%c2_6, %c0_7, %c0_8] : memref<3x2x32xf32, #tpu.memory_space<vmem>>, vector<1x2x32xf32>
    %21 = vector.shape_cast %20 : vector<1x2x32xf32> to vector<2x32xf32>
    %c0_9 = arith.constant 0 : index
    %c0_10 = arith.constant 0 : index
    %c0_11 = arith.constant 0 : index
    %22 = vector.load %arg2[%c0_9, %c0_10, %c0_11] : memref<2x2x32xf32, #tpu.memory_space<vmem>>, vector<1x2x32xf32>
    %23 = vector.shape_cast %22 : vector<1x2x32xf32> to vector<2x32xf32>
    %c1_12 = arith.constant 1 : index
    %c0_13 = arith.constant 0 : index
    %c0_14 = arith.constant 0 : index
    %24 = vector.load %arg2[%c1_12, %c0_13, %c0_14] : memref<2x2x32xf32, #tpu.memory_space<vmem>>, vector<1x2x32xf32>
    %25 = vector.shape_cast %24 : vector<1x2x32xf32> to vector<2x32xf32>
    %26 = vector.broadcast %0 : f32 to vector<2x32xf32>
    %27 = arith.mulf %26, %17 : vector<2x32xf32>
    %28 = vector.broadcast %1 : f32 to vector<2x32xf32>
    %29 = arith.mulf %28, %19 : vector<2x32xf32>
    %30 = arith.addf %27, %29 : vector<2x32xf32>
    %31 = vector.broadcast %2 : f32 to vector<2x32xf32>
    %32 = arith.mulf %31, %21 : vector<2x32xf32>
    %33 = arith.addf %30, %32 : vector<2x32xf32>
    %34 = vector.broadcast %9 : f32 to vector<2x32xf32>
    %35 = arith.addf %33, %34 : vector<2x32xf32>
    %36 = vector.broadcast %3 : f32 to vector<2x32xf32>
    %37 = arith.mulf %36, %17 : vector<2x32xf32>
    %38 = vector.broadcast %4 : f32 to vector<2x32xf32>
    %39 = arith.mulf %38, %19 : vector<2x32xf32>
    %40 = arith.addf %37, %39 : vector<2x32xf32>
    %41 = vector.broadcast %5 : f32 to vector<2x32xf32>
    %42 = arith.mulf %41, %21 : vector<2x32xf32>
    %43 = arith.addf %40, %42 : vector<2x32xf32>
    %44 = vector.broadcast %10 : f32 to vector<2x32xf32>
    %45 = arith.addf %43, %44 : vector<2x32xf32>
    %46 = vector.broadcast %6 : f32 to vector<2x32xf32>
    %47 = arith.mulf %46, %17 : vector<2x32xf32>
    %48 = vector.broadcast %7 : f32 to vector<2x32xf32>
    %49 = arith.mulf %48, %19 : vector<2x32xf32>
    %50 = arith.addf %47, %49 : vector<2x32xf32>
    %51 = vector.broadcast %8 : f32 to vector<2x32xf32>
    %52 = arith.mulf %51, %21 : vector<2x32xf32>
    %53 = arith.addf %50, %52 : vector<2x32xf32>
    %54 = vector.broadcast %11 : f32 to vector<2x32xf32>
    %55 = arith.addf %53, %54 : vector<2x32xf32>
    %cst = arith.constant 1.000000e+00 : f32
    %56 = vector.broadcast %cst : f32 to vector<2x32xf32>
    %57 = arith.divf %56, %55 : vector<2x32xf32>
    %58 = vector.broadcast %12 : f32 to vector<2x32xf32>
    %59 = arith.mulf %58, %35 : vector<2x32xf32>
    %60 = arith.mulf %59, %57 : vector<2x32xf32>
    %61 = vector.broadcast %14 : f32 to vector<2x32xf32>
    %62 = arith.addf %60, %61 : vector<2x32xf32>
    %63 = vector.broadcast %13 : f32 to vector<2x32xf32>
    %64 = arith.mulf %63, %45 : vector<2x32xf32>
    %65 = arith.mulf %64, %57 : vector<2x32xf32>
    %66 = vector.broadcast %15 : f32 to vector<2x32xf32>
    %67 = arith.addf %65, %66 : vector<2x32xf32>
    %68 = arith.subf %23, %62 : vector<2x32xf32>
    %69 = arith.subf %25, %67 : vector<2x32xf32>
    %70 = arith.mulf %68, %68 : vector<2x32xf32>
    %71 = arith.mulf %69, %69 : vector<2x32xf32>
    %cst_15 = arith.constant 1.000000e+04 : f32
    %72 = vector.broadcast %cst_15 : f32 to vector<2x32xf32>
    %73 = arith.mulf %72, %70 : vector<2x32xf32>
    %cst_16 = arith.constant 1.000000e+04 : f32
    %74 = vector.broadcast %cst_16 : f32 to vector<2x32xf32>
    %75 = arith.addf %70, %74 : vector<2x32xf32>
    %76 = tpu.reciprocal %75 {approx = true} : vector<2x32xf32> -> vector<2x32xf32>
    %77 = arith.mulf %73, %76 : vector<2x32xf32>
    %cst_17 = arith.constant 1.000000e+04 : f32
    %78 = vector.broadcast %cst_17 : f32 to vector<2x32xf32>
    %79 = arith.mulf %78, %71 : vector<2x32xf32>
    %cst_18 = arith.constant 1.000000e+04 : f32
    %80 = vector.broadcast %cst_18 : f32 to vector<2x32xf32>
    %81 = arith.addf %71, %80 : vector<2x32xf32>
    %82 = tpu.reciprocal %81 {approx = true} : vector<2x32xf32> -> vector<2x32xf32>
    %83 = arith.mulf %79, %82 : vector<2x32xf32>
    %c0_19 = arith.constant 0 : index
    %c0_20 = arith.constant 0 : index
    %84 = vector.load %arg4[%c0_19, %c0_20] : memref<2x32xf32, #tpu.memory_space<vmem>>, vector<2x32xf32>
    %c0_21 = arith.constant 0 : index
    %c0_22 = arith.constant 0 : index
    %85 = vector.load %arg3[%c0_21, %c0_22] : memref<2x32xf32, #tpu.memory_space<vmem>>, vector<2x32xf32>
    %86 = arith.mulf %84, %85 : vector<2x32xf32>
    %87 = arith.mulf %86, %86 : vector<2x32xf32>
    %88 = arith.addf %77, %83 : vector<2x32xf32>
    %89 = arith.mulf %87, %88 : vector<2x32xf32>
    %90 = vector.shape_cast %89 : vector<2x32xf32> to vector<1x2x32xf32>
    %cst_23 = arith.constant dense<0.000000e+00> : vector<1xf32>
    %91 = vector.multi_reduction <add>, %90, %cst_23 [1, 2] : vector<1x2x32xf32> to vector<1xf32>
    %92 = vector.shape_cast %91 : vector<1xf32> to vector<1x1x1xf32>
    %93 = vector.extract %92[0, 0, 0] : f32 from vector<1x1x1xf32>
    %cst_24 = arith.constant 1.000000e+00 : f32
    %94 = arith.mulf %93, %cst_24 : f32
    %c0_25 = arith.constant 0 : index
    %c0_26 = arith.constant 0 : index
    %95 = vector.load %arg5[%c0_25, %c0_26] : memref<2x103xf32, #tpu.memory_space<vmem>>, vector<2x103xf32>
    %c0_27 = arith.constant 0 : index
    %c0_28 = arith.constant 0 : index
    %96 = vector.load %arg6[%c0_27, %c0_28] : memref<2x103xf32, #tpu.memory_space<vmem>>, vector<2x103xf32>
    %97 = arith.subf %95, %96 : vector<2x103xf32>
    %c0_29 = arith.constant 0 : index
    %c0_30 = arith.constant 0 : index
    %98 = vector.load %arg7[%c0_29, %c0_30] : memref<1x103xf32, #tpu.memory_space<vmem>>, vector<1x103xf32>
    %99 = vector.broadcast %98 : vector<1x103xf32> to vector<2x103xf32>
    %100 = arith.mulf %99, %97 : vector<2x103xf32>
    %101 = arith.mulf %100, %97 : vector<2x103xf32>
    %102 = vector.shape_cast %101 : vector<2x103xf32> to vector<1x2x103xf32>
    %cst_31 = arith.constant dense<0.000000e+00> : vector<1xf32>
    %103 = vector.multi_reduction <add>, %102, %cst_31 [1, 2] : vector<1x2x103xf32> to vector<1xf32>
    %104 = vector.shape_cast %103 : vector<1xf32> to vector<1x1x1xf32>
    %105 = vector.extract %104[0, 0, 0] : f32 from vector<1x1x1xf32>
    %106 = arith.addf %94, %105 : f32
    %c0_32 = arith.constant 0 : index
    %c0_33 = arith.constant 0 : index
    %107 = vector.load %arg8[%c0_32, %c0_33] : memref<2x10xf32, #tpu.memory_space<vmem>>, vector<2x10xf32>
    %108 = arith.mulf %107, %107 : vector<2x10xf32>
    %109 = vector.shape_cast %108 : vector<2x10xf32> to vector<1x2x10xf32>
    %cst_34 = arith.constant dense<0.000000e+00> : vector<1xf32>
    %110 = vector.multi_reduction <add>, %109, %cst_34 [1, 2] : vector<1x2x10xf32> to vector<1xf32>
    %111 = vector.shape_cast %110 : vector<1xf32> to vector<1x1x1xf32>
    %112 = vector.extract %111[0, 0, 0] : f32 from vector<1x1x1xf32>
    %113 = arith.mulf %112, %112 : f32
    %cst_35 = arith.constant 5.000000e-01 : f32
    %114 = arith.mulf %113, %cst_35 : f32
    %115 = arith.addf %106, %114 : f32
    %c0_36 = arith.constant 0 : index
    %c0_37 = arith.constant 0 : index
    %116 = memref.load %arg9[%c0_36, %c0_37] : memref<1x1xf32, #tpu.memory_space<smem>>
    memref.store %115, %arg9[%c0_36, %c0_37] : memref<1x1xf32, #tpu.memory_space<smem>>
    return
  }
}

</mosaic_0001>

<bundles_post_ra>
// kernel: tpu_custom_call.1
= control target key start
LH: loop header
LB: loop body
LE: loop exit
PB: predicated region body
PF: predicated region fallthrough
CT: control target
= control target key end

     0   :  { %14 = vsyncpa [#allocation4], 0  ;;  %s416_s0 = inlined_call_operand.hbm [shape: f32[16], index: 0, kind: input, shape index: {}]   ;;  %s417_s1 = inlined_call_operand.hbm [shape: f32[3,2,32], index: 1, kind: input, shape index: {}]   ;;  %s418_s2 = inlined_call_operand.vmem [shape: f32[2,2,32], index: 2, kind: input, shape index: {}]   ;;  %s419_s3 = inlined_call_operand.vmem [shape: f32[2,32], index: 3, kind: input, shape index: {}]   ;;  %s420_s4 = inlined_call_operand.vmem [shape: f32[2,32], index: 4, kind: input, shape index: {}]   ;;  %s421_s5 = inlined_call_operand.vmem [shape: f32[2,103], index: 5, kind: input, shape index: {}]   ;;  %s422_s6 = inlined_call_operand.vmem [shape: f32[2,103], index: 6, kind: input, shape index: {}]   ;;  %s423_s7 = inlined_call_operand.vmem [shape: f32[1,103], index: 7, kind: input, shape index: {}]   ;;  %s424_s8 = inlined_call_operand.vmem [shape: f32[2,10], index: 8, kind: input, shape index: {}]   ;;  %s425_s9 = inlined_call_operand.hbm [shape: f32[1,1], index: 9, kind: output, shape index: {}]  }
   0x1   :  { %15 = vsyncpa [#allocation3], 0 }
   0x2   :  { %16 = vsyncpa [#allocation5], 0  ;;  %s244_s11 = scalar_lea.hbm %s416_s0, 16 }
   0x3   :  { %p245_p0 = scmp.ne.s32.totalorder %s416_s0, %s244_s11  ;;  %p248_p1 = scmp.lt.u32.totalorder %s244_s11, %s416_s0 }
   0x5   :  { %p250_p2 = pnand %p248_p1, %p245_p0 }
   0x7   :  { %253 = shalt.err (!%p250_p2)
}
   0x8   :  { %s292_s16 = smov [#allocation2]   ;;  %s293_s19 = smov [#allocation6]  }
   0x9   :  { %24 = dma.hbm_to_smem %s416_s0, 16, %s292_s16, [#allocation4]  }
   0xa   :  { %s30_s20 = sshll.u32 %s293_s19, 4  ;;  %s254_s23 = scalar_lea.hbm %s417_s1, 96  ;;  %s31_s20 = int_to_ptr.vmem [resolvable:$true] %s30_s20 }
   0xb   :  { %p255_p3 = scmp.ne.s32.totalorder %s417_s1, %s254_s23  ;;  %p258_p4 = scmp.lt.u32.totalorder %s254_s23, %s417_s1 }
   0xd   :  { %p260_p5 = pnand %p258_p4, %p255_p3 }
   0xf   :  { %263 = shalt.err (!%p260_p5)
}
  0x10   :  { %s264_s28 = scalar_lea.vmem %s31_s20, 96  ;;  %p269_p7 = scmp.lt.s32.totalorder %s31_s20, %s31_s20 }
  0x11   :  { %p265_p6 = scmp.ne.s32.totalorder %s31_s20, %s264_s28  ;;  %p270_p8 = scmp.lt.s32.totalorder %s264_s28, %s264_s28 }
  0x13   :  { %p271_p9 = por %p270_p8, %p269_p7 }
  0x15   :  { %p272_p10 = pnand %p271_p9, %p265_p6 }
  0x17   :  { %275 = shalt.err (!%p272_p10)
}
  0x18   :  { %s294_s0 = smov 32   ;;  %s295_s29 = smov 2  }
  0x19   :  { %36 = dma.hbm_to_vmem [thread:$0]  %s417_s1, 96, %s31_s20, [#allocation3], %s294_s0, %s294_s0, %s295_s29  }
  0x1a   :  { %286 = dma.done.wait [#allocation4], 16  }
  0x1b   :  { %287 = vsyncadd [#allocation4], 4294967280 }
  0x1c   :  { %288 = dma.done.wait [#allocation3], 96  }
  0x1d   :  { %289 = vsyncadd [#allocation3], 4294967200 }
  0x1e   :  { %57 = sfence }
  0x1f   :  { %v177_v0 = vld [vmem:[%s424_s8] sm:$0x3]  ;;  %vm179_vm0 = vcmask 74752   ;;  %s58_s13 = sld [smem:[#allocation2]]  ;;  %s210_s14 = sld [smem:[#allocation2 + $0x1]]  ;;  %vm142_vm1 = vcmask 254976  }
  0x20   :  { %v178_v1 = vmul.f32 %v177_v0, %v177_v0  ;;  %s374_s15 = sld [smem:[#allocation2 + $0x2]]  ;;  %s212_s16 = sld [smem:[#allocation2 + $0x3]]  ;;  %v74_v4 = vld [vmem:[#allocation6] sm:$0x3]  ;;  %v76_v6 = vld [vmem:[#allocation6 + $0x2] sm:$0x3] }
  0x21   :  { %s213_s17 = sld [smem:[#allocation2 + $0x4]]  ;;  %s376_s1 = sld [smem:[#allocation2 + $0x5]]  ;;  %v78_v13 = vld [vmem:[#allocation6 + $0x4] sm:$0x3]  ;;  %v79_v45 = vld [vmem:[%s418_s2] sm:$0x3] }
  0x22   :  { %v180_v2 = vsel %vm179_vm0, %v178_v1, 0.0  ;;  %s215_s18 = sld [smem:[#allocation2 + $0x6]]  ;;  %s216_s19 = sld [smem:[#allocation2 + $0x7]]  ;;  %v225_v46 = vld [vmem:[%s418_s2 + $0x2] sm:$0x3]  ;;  %vm165_vm2 = vcmask 836608  }
  0x23   :  { %181 = vadd.xlane.f32.xlu1 %v180_v2  ;;  %s217_s20 = sld [smem:[#allocation2 + $0x8]]  ;;  %s378_s21 = sld [smem:[#allocation2 + $0xb]]  ;;  %v136_v55 = vld [vmem:[%s420_s4] sm:$0x3] }
  0x24   :  { %s218_s8 = sld [smem:[#allocation2 + $0x9]]  ;;  %s219_s22 = sld [smem:[#allocation2 + $0xa]]  ;;  %v137_v56 = vld [vmem:[%s419_s3] sm:$0x3] }
  0x25   :  { %v82_v3 = vstv %s58_s13  ;;  %v84_v5 = vstv %s210_s14  ;;  %s221_s23 = sld [smem:[#allocation2 + $0xc]]  ;;  %s222_s24 = sld [smem:[#allocation2 + $0xd]]  ;;  %v153_v57 = vld [vmem:[%s421_s5] sm:$0x3]  ;;  %v138_v61 = vmul.f32 %v137_v56, %v136_v55 }
  0x26   :  { %v92_v7 = vstv %s212_s16  ;;  %v83_v9 = vmul.f32 %v82_v3, %v74_v4  ;;  %v85_v10 = vmul.f32 %v84_v5, %v76_v6  ;;  %v87_v11 = vstv %s374_s15  ;;  %s223_s25 = sld [smem:[#allocation2 + $0xe]]  ;;  %s224_s26 = sld [smem:[#allocation2 + $0xf]]  ;;  %v154_v58 = vld [vmem:[%s422_s6] sm:$0x3] }
  0x27   :  { %v94_v8 = vstv %s213_s17  ;;  %v93_v14 = vmul.f32 %v92_v7, %v74_v4  ;;  %v97_v18 = vstv %s376_s1  ;;  %v88_v21 = vmul.f32 %v87_v11, %v78_v13  ;;  %v226_v63 = vld [vmem:[%s423_s7] ss:$0 sm:$0xff] }
  0x28   :  { %v102_v12 = vstv %s215_s18  ;;  %v95_v15 = vmul.f32 %v94_v8, %v76_v6  ;;  %v104_v17 = vstv %s216_s19  ;;  %v86_v24 = vadd.f32 %v85_v10, %v83_v9 }
  0x29   :  { %v103_v16 = vmul.f32 %v102_v12, %v74_v4  ;;  %v105_v19 = vmul.f32 %v104_v17, %v76_v6  ;;  %v107_v20 = vstv %s217_s20  ;;  %v98_v26 = vmul.f32 %v97_v18, %v78_v13 }
  0x2a   :  { %v108_v23 = vmul.f32 %v107_v20, %v78_v13  ;;  %v96_v25 = vadd.f32 %v95_v15, %v93_v14  ;;  %v110_v27 = vstv %s378_s21  ;;  %v89_v30 = vadd.f32 %v88_v21, %v86_v24  ;;  %s276_s21 = scalar_lea.hbm %s425_s9, 16 }
  0x2b   :  { %v106_v22 = vadd.f32 %v105_v19, %v103_v16  ;;  %v90_v32 = vstv %s218_s8  ;;  %v100_v33 = vstv %s219_s22  ;;  %v114_v36 = vstv %s221_s23  ;;  %p277_p11 = scmp.ne.s32.totalorder %s425_s9, %s276_s21  ;;  %p280_p12 = scmp.lt.u32.totalorder %s276_s21, %s425_s9 }
  0x2c   :  { %v99_v31 = vadd.f32 %v98_v26, %v96_v25  ;;  %v91_v34 = vadd.f32 %v90_v32, %v89_v30  ;;  %v119_v37 = vstv %s222_s24  ;;  %v117_v41 = vstv %s223_s25 }
  0x2d   :  { %v109_v28 = vadd.f32 %v108_v23, %v106_v22  ;;  %v122_v42 = vstv %s224_s26  ;;  %v155_v62 = vsub.f32 %v153_v57, %v154_v58  ;;  %v139_v4 = vmul.f32 %v138_v61, %v138_v61  ;;  %p282_p13 = pnand %p280_p12, %p277_p11 }
  0x2e   :  { %v101_v35 = vadd.f32 %v100_v33, %v99_v31  ;;  %v115_v38 = vmul.f32 %v114_v36, %v91_v34 }
  0x2f   :  { %v111_v29 = vadd.f32 %v110_v27, %v109_v28  ;;  %v163_v5 = vmul.f32 %v226_v63, %v155_v62 }
  0x30   :  { %v120_v39 = vmul.f32 %v119_v37, %v101_v35 }
  0x31   :  { %238 = vrcp.f32 %v111_v29  ;;  %v164_v8 = vmul.f32 %v163_v5, %v155_v62 }
  0x33   :  { %v166_v10 = vsel %vm165_vm2, %v164_v8, 0.0 }
  0x3b   :  { %v239_v40 = vpop.eup %238 }
  0x3c   :  { %v116_v43 = vmul.f32 %v239_v40, %v115_v38  ;;  %v121_v44 = vmul.f32 %v239_v40, %v120_v39 }
  0x3e   :  { %v118_v47 = vadd.f32 %v117_v41, %v116_v43  ;;  %v123_v48 = vadd.f32 %v122_v42, %v121_v44 }
  0x40   :  { %v124_v49 = vsub.f32 %v79_v45, %v118_v47  ;;  %v125_v50 = vsub.f32 %v225_v46, %v123_v48 }
  0x42   :  { %v126_v51 = vmul.f32 %v124_v49, %v124_v49  ;;  %v127_v52 = vmul.f32 %v125_v50, %v125_v50 }
  0x44   :  { %v129_v53 = vadd.f32 10000.0, %v126_v51  ;;  %v133_v54 = vadd.f32 10000.0, %v127_v52  ;;  %v128_v59 = vmul.f32 10000.0, %v126_v51  ;;  %v132_v60 = vmul.f32 10000.0, %v127_v52 }
  0x46   :  { %240 = vrcp.f32 %v129_v53 }
  0x47   :  { %242 = vrcp.f32 %v133_v54 }
  0x50   :  { %v241_v0 = vpop.eup %240 }
  0x51   :  { %v243_v1 = vpop.eup %242  ;;  %v131_v2 = vmul.f32 %v241_v0, %v128_v59 }
  0x52   :  { %v135_v3 = vmul.f32 %v243_v1, %v132_v60 }
  0x54   :  { %v140_v6 = vadd.f32 %v135_v3, %v131_v2 }
  0x56   :  { %v141_v7 = vmul.f32 %v140_v6, %v139_v4 }
  0x58   :  { %v143_v9 = vsel %vm142_vm1, %v141_v7, 0.0 }
  0x59   :  { %144 = vadd.xlane.f32.xlu0 %v143_v9 }
  0x5d   :  { %167 = vadd.xlane.f32.xlu0 %v166_v10 }
  0xb0   :  { %v182_v11 = vpop.xlane.xlu1 %181 }
  0xb1   :  { %v183_v12 = vrot.slane %v182_v11, 4 }
  0xb3   :  { %v184_v13 = vadd.f32 %v183_v12, %v182_v11 }
  0xb5   :  { %v185_v17 = vrot.slane %v184_v13, 2 }
  0xb7   :  { %v186_v23 = vadd.f32 %v185_v17, %v184_v13 }
  0xb9   :  { %v187_v28 = vrot.slane %v186_v23, 1 }
  0xbb   :  { %v188_v31 = vadd.f32 %v187_v28, %v186_v23 }
  0xe6   :  { %v145_v14 = vpop.xlane.xlu0 %144 }
  0xe7   :  { %v146_v15 = vrot.slane %v145_v14, 4 }
  0xe9   :  { %v147_v16 = vadd.f32 %v146_v15, %v145_v14 }
  0xea   :  { %v168_v18 = vpop.xlane.xlu0 %167 }
  0xeb   :  { %v148_v19 = vrot.slane %v147_v16, 2  ;;  %v169_v20 = vrot.slane %v168_v18, 4 }
  0xed   :  { %v170_v21 = vadd.f32 %v169_v20, %v168_v18  ;;  %v149_v22 = vadd.f32 %v148_v19, %v147_v16 }
  0xef   :  { %v171_v24 = vrot.slane %v170_v21, 2  ;;  %v150_v25 = vrot.slane %v149_v22, 1 }
  0xf1   :  { %v172_v26 = vadd.f32 %v171_v24, %v170_v21  ;;  %v151_v27 = vadd.f32 %v150_v25, %v149_v22 }
  0xf3   :  { %227 = vpush %v151_v27  ;;  %v173_v29 = vrot.slane %v172_v26, 1 }
  0xf5   :  { %v174_v30 = vadd.f32 %v173_v29, %v172_v26 }
  0xf7   :  { %229 = vpush %v174_v30 }
  0xf8   :  { %231 = vpush %v188_v31 }
 0x124   :  { %s228_s3 = spop %227 }
 0x128   :  { %s230_s4 = spop %229 }
 0x129   :  { %s232_s5 = spop %231  ;;  %s176_s7 = sadd.f32 %s230_s4, %s228_s3 }
 0x12a   :  { %s190_s6 = smul.f32 %s232_s5, %s232_s5 }
 0x12c   :  { %s191_s1 = smul.f32 0.5, %s190_s6 }
 0x12e   :  { %s192_s18 = sadd.f32 %s191_s1, %s176_s7 }
 0x130   :  { %194 = sst [smem:[#allocation7]] %s192_s18 }
 0x131   :  { %285 = shalt.err (!%p282_p13)
}
 0x132   :  { %s296_s25 = smov [#allocation7]  }
 0x133   :  { %202 = dma.smem_to_hbm %s296_s25, 16, %s425_s9, [#allocation5]  }
 0x134   :  { %290 = dma.done.wait [#allocation5], 16  }
 0x135   :  { %291 = vsyncadd [#allocation5], 4294967280 }
 0x136   :  { %206 = sfence }
 0x137   :  { %207 = vsyncpa [#allocation3], 1 }
 0x138   :  { %208 = vsyncpa [#allocation4], 1 }
 0x139   :  { %209 = vsyncpa [#allocation5], 1 }

</bundles_post_ra>
